<compile_context>
chip_gen: v6e
topology: v6e:2x2x1
jax: 0.10.0
libtpu: 0.0.40
codegen_flags: <defaults>
</compile_context>

<pallas_src>
import functools
import math

import jax
import jax.numpy as jnp
from jax.experimental import pallas as pl
from jax.experimental.pallas import tpu as pltpu

PAD = 0                      # padding_idx for all vocabularies
_DOT_DTYPE = jnp.bfloat16    # MXU operand dtype (accumulation stays f32)
_NEG_INF = -1e9


# --------------------------- device-derived tuning --------------------------

def _detect_vmem_capacity():
    try:
        info = pltpu.get_tpu_info()
        for name in ("vmem_capacity_bytes", "vmem_bytes", "vmem_size_bytes"):
            cap = getattr(info, name, None)
            if cap:
                cap = int(cap)
                if 16 * 1024 * 1024 <= cap <= 1024 * 1024 * 1024:
                    return cap
    except Exception:
        pass
    return 64 * 1024 * 1024          # conservative (v7x-sized) fallback


_VMEM_CAP = _detect_vmem_capacity()
# headroom below physical VMEM: ~96 MiB on 128-MiB parts (v5e/v6e), ~48 MiB on 64-MiB v7x
_VMEM_LIMIT = max(32 * 1024 * 1024, min((_VMEM_CAP * 3) // 4, 112 * 1024 * 1024))
# bigger row tiles on 128-MiB parts; re-derived (smaller) for 64-MiB v7x
_ROW_TILE = 512 if _VMEM_CAP >= 100 * 1024 * 1024 else 256

_SINGLE_BUF = None


def _single_buffer_supported():
    """Probe whether BlockSpec(pipeline_mode=pl.Buffered(1)) lowers on this jax/TPU."""
    global _SINGLE_BUF
    if _SINGLE_BUF is None:
        try:
            def _probe(x_ref, o_ref):
                o_ref[...] = x_ref[...] + 1.0
            spec = pl.BlockSpec((8, 128), lambda i: (0, 0), pipeline_mode=pl.Buffered(1))
            y = pl.pallas_call(
                _probe,
                out_shape=jax.ShapeDtypeStruct((8, 128), jnp.float32),
                grid=(2,),
                in_specs=[spec],
                out_specs=pl.BlockSpec((8, 128), lambda i: (0, 0)),
            )(jnp.zeros((8, 128), jnp.float32))
            jax.block_until_ready(y)
            _SINGLE_BUF = bool(jnp.all(y == 1.0))
        except Exception:
            _SINGLE_BUF = False
    return _SINGLE_BUF


def _compiler_params():
    return pltpu.CompilerParams(dimension_semantics=("parallel",),
                                vmem_limit_bytes=_VMEM_LIMIT)


def _round_up(n, m):
    return ((n + m - 1) // m) * m


def _row_tiling(n):
    n8 = _round_up(n, 8)
    if n8 <= 8:
        return n8, n8
    # prefer >=2 grid steps so ("parallel",) can use both TensorCores on v7x
    tile = min(_ROW_TILE, _round_up((n8 + 1) // 2, 8))
    return tile, _round_up(n8, tile)


def _pad_rows(x2, n_pad):
    n = x2.shape[0]
    if n == n_pad:
        return x2
    return jnp.pad(x2, ((0, n_pad - n), (0, 0)))


def _shared_spec(shape):
    # weights / biases: same block every grid step -> single-buffer when supported
    nd = len(shape)
    imap = lambda i, nd=nd: (0,) * nd
    if _single_buffer_supported():
        return pl.BlockSpec(shape, imap, pipeline_mode=pl.Buffered(1))
    return pl.BlockSpec(shape, imap)


def _row_call(kernel, row_arrays, shared_arrays, douts, out_dtype=jnp.float32):
    """Launch `kernel` on a 1-D row-tiled parallel grid.

    row_arrays:    2-D (N, *) arrays tiled along rows (padded to the tile).
    shared_arrays: weights / biases, full block every grid step (single-buffered).
    douts:         int (single output) or list of ints (multiple outputs).
    """
    single = isinstance(douts, int)
    dout_list = [douts] if single else list(douts)
    n = row_arrays[0].shape[0]
    tile, n_pad = _row_tiling(n)
    row_arrays = [_pad_rows(a, n_pad) for a in row_arrays]
    in_specs = ([pl.BlockSpec((tile, a.shape[1]), lambda i: (i, 0)) for a in row_arrays]
                + [_shared_spec(a.shape) for a in shared_arrays])
    out_shape = tuple(jax.ShapeDtypeStruct((n_pad, d), out_dtype) for d in dout_list)
    out_specs = tuple(pl.BlockSpec((tile, d), lambda i: (i, 0)) for d in dout_list)
    if single:
        out_shape, out_specs = out_shape[0], out_specs[0]
    outs = pl.pallas_call(
        kernel,
        out_shape=out_shape,
        grid=(n_pad // tile,),
        in_specs=in_specs,
        out_specs=out_specs,
        compiler_params=_compiler_params(),
    )(*row_arrays, *shared_arrays)
    outs = (outs,) if single else tuple(outs)
    outs = tuple(o[:n] if n_pad != n else o for o in outs)
    return outs[0] if single else outs


# ----------------------------- Pallas kernels ------------------------------

def _add_ln_kernel(x_ref, y_ref, g_ref, b_ref, o_ref, *, eps):
    x = x_ref[...].astype(jnp.float32) + y_ref[...].astype(jnp.float32)
    mu = jnp.mean(x, axis=-1, keepdims=True)
    var = jnp.mean((x - mu) ** 2, axis=-1, keepdims=True)
    y = (x - mu) * jax.lax.rsqrt(var + eps)
    o_ref[...] = (y * g_ref[...] + b_ref[...]).astype(o_ref.dtype)


def pallas_add_layer_norm(x, y, gamma, beta, eps=1e-5):
    shp = x.shape
    D = shp[-1]
    out = _row_call(functools.partial(_add_ln_kernel, eps=eps),
                    [x.reshape(-1, D), y.reshape(-1, D)], [gamma, beta], D)
    return out.reshape(shp)


def _linear_kernel(x_ref, w_ref, b_ref, o_ref, *, act):
    y = jnp.dot(x_ref[...].astype(_DOT_DTYPE), w_ref[...],
                preferred_element_type=jnp.float32) + b_ref[...].astype(jnp.float32)
    if act == "tanh":
        y = jnp.tanh(y)
    elif act == "relu":
        y = jnp.maximum(y, 0.0)
    elif act == "sigmoid":
        y = jax.nn.sigmoid(y)
    o_ref[...] = y.astype(o_ref.dtype)


def pallas_linear(x, w, b, act=None):
    orig = x.shape
    din, dout = orig[-1], w.shape[1]
    out = _row_call(functools.partial(_linear_kernel, act=act),
                    [x.reshape(-1, din)], [w.astype(_DOT_DTYPE), b], dout)
    return out.reshape(orig[:-1] + (dout,))


def _linear_add_ln_kernel(x_ref, r_ref, w_ref, b_ref, g_ref, be_ref, o_ref, *, eps):
    # fused: out-projection + residual add + LayerNorm
    y = jnp.dot(x_ref[...].astype(_DOT_DTYPE), w_ref[...],
                preferred_element_type=jnp.float32) + b_ref[...]
    y = y + r_ref[...].astype(jnp.float32)
    mu = jnp.mean(y, axis=-1, keepdims=True)
    var = jnp.mean((y - mu) ** 2, axis=-1, keepdims=True)
    y = (y - mu) * jax.lax.rsqrt(var + eps)
    o_ref[...] = (y * g_ref[...] + be_ref[...]).astype(o_ref.dtype)


def pallas_linear_add_ln(x, residual, w, b, gamma, beta, eps=1e-5):
    shp = residual.shape
    D = shp[-1]
    out = _row_call(functools.partial(_linear_add_ln_kernel, eps=eps),
                    [x.reshape(-1, x.shape[-1]), residual.reshape(-1, D)],
                    [w.astype(_DOT_DTYPE), b, gamma, beta], D)
    return out.reshape(shp)


def _ffn_ln_kernel(x_ref, w1_ref, b1_ref, w2_ref, b2_ref, g_ref, be_ref, o_ref, *, eps):
    # fused: FFN + residual add + LayerNorm
    x = x_ref[...].astype(jnp.float32)
    h = jnp.dot(x.astype(_DOT_DTYPE), w1_ref[...],
                preferred_element_type=jnp.float32) + b1_ref[...]
    h = jnp.maximum(h, 0.0)
    y = jnp.dot(h.astype(_DOT_DTYPE), w2_ref[...],
                preferred_element_type=jnp.float32) + b2_ref[...]
    y = y + x
    mu = jnp.mean(y, axis=-1, keepdims=True)
    var = jnp.mean((y - mu) ** 2, axis=-1, keepdims=True)
    y = (y - mu) * jax.lax.rsqrt(var + eps)
    o_ref[...] = (y * g_ref[...] + be_ref[...]).astype(o_ref.dtype)


def pallas_ffn_ln(x, p, gamma, beta, eps=1e-5):
    # TODO(synk): add a K-axis grid (f32 accumulator + pl.when init/finalize) when D/F grow
    # beyond a single VMEM block (needed at production sizes on 64-MiB v7x).
    shp = x.shape
    D = shp[-1]
    out = _row_call(functools.partial(_ffn_ln_kernel, eps=eps),
                    [x.reshape(-1, D)],
                    [p["w1"].astype(_DOT_DTYPE), p["b1"],
                     p["w2"].astype(_DOT_DTYPE), p["b2"], gamma, beta], D)
    return out.reshape(shp)


def _head_kernel(x_ref, wg_ref, bg_ref, wq_ref, bq_ref, wt_ref, bt_ref,
                 p_ref, q_ref, g_ref):
    # fused decoder head: generation softmax probs | copy query | copy gate
    x = x_ref[...].astype(_DOT_DTYPE)
    logits = jnp.dot(x, wg_ref[...], preferred_element_type=jnp.float32) + bg_ref[...]
    m = jnp.max(logits, axis=-1, keepdims=True)
    e = jnp.exp(logits - m)
    p_ref[...] = (e * pl.reciprocal(jnp.sum(e, axis=-1, keepdims=True),
                                    approx=True)).astype(p_ref.dtype)
    q_ref[...] = (jnp.dot(x, wq_ref[...], preferred_element_type=jnp.float32)
                  + bq_ref[...]).astype(q_ref.dtype)
    g_ref[...] = jax.nn.sigmoid(jnp.dot(x, wt_ref[...], preferred_element_type=jnp.float32)
                                + bt_ref[...]).astype(g_ref.dtype)


def pallas_decoder_head(x, p):
    # The generation logits are padded to a multiple of 128 lanes (pad bias -1e30 -> prob 0),
    # so every store is unmasked / lane-dense; padded columns are carried downstream.
    # TODO(synk): tile the vocab dim with an online LSE for production-size vocabularies
    # (a (tile, V) f32 block does not fit v7x's 64-MiB VMEM for very large V).
    B, T, D = x.shape
    V = p["gen_w"].shape[1]
    Vp = _round_up(V, 128)
    gen_w, gen_b = p["gen_w"], p["gen_b"]
    if Vp != V:
        gen_w = jnp.pad(gen_w, ((0, 0), (0, Vp - V)))
        gen_b = jnp.pad(gen_b, ((0, 0), (0, Vp - V)), constant_values=-1e30)
    probs, q, gate = _row_call(
        _head_kernel, [x.reshape(B * T, D)],
        [gen_w.astype(_DOT_DTYPE), gen_b,
         p["copy_q_w"].astype(_DOT_DTYPE), p["copy_q_b"],
         p["gate_w"].astype(_DOT_DTYPE), p["gate_b"]],
        [Vp, D, 1])
    return probs.reshape(B, T, Vp), q.reshape(B, T, D), gate.reshape(B, T, 1)


def _mha_kernel(*refs, H, dh, scale, causal, has_rel):
    if has_rel:
        q_ref, k_ref, v_ref, kpm_ref, rel_ref, o_ref = refs
    else:
        q_ref, k_ref, v_ref, kpm_ref, o_ref = refs
    q = q_ref[0].astype(jnp.float32) * scale        # (Tq, D); scale folded into q
    k = k_ref[0]
    v = v_ref[0]
    Tq, Tk = q.shape[0], k.shape[0]
    kpm = kpm_ref[0]                                # (1, Tk)  1.0 = masked key
    if causal:                                      # causal mask built in-kernel (no HBM tensor)
        row = jax.lax.broadcasted_iota(jnp.int32, (Tq, Tk), 0)
        col = jax.lax.broadcasted_iota(jnp.int32, (Tq, Tk), 1)
        cmask = col > row
    outs = []
    for h in range(H):                              # static loop: lane-sliced heads, no transposes
        sl = slice(h * dh, (h + 1) * dh)
        s = jax.lax.dot_general(q[:, sl].astype(_DOT_DTYPE), k[:, sl].astype(_DOT_DTYPE),
                                (((1,), (1,)), ((), ())),
                                preferred_element_type=jnp.float32)        # (Tq, Tk)
        if has_rel:
            s = s + rel_ref[0, h]                   # per-head relation bias (lane dim = Tk)
        s = jnp.where(kpm > 0.5, _NEG_INF, s)
        if causal:
            s = jnp.where(cmask, _NEG_INF, s)
        m = jnp.max(s, axis=-1, keepdims=True)
        p = jnp.exp(s - m)
        p = p * pl.reciprocal(jnp.sum(p, axis=-1, keepdims=True), approx=True)
        outs.append(jnp.dot(p.astype(_DOT_DTYPE), v[:, sl].astype(_DOT_DTYPE),
                            preferred_element_type=jnp.float32))
    o_ref[0] = jnp.concatenate(outs, axis=-1).astype(o_ref.dtype)   # (Tq, D): lane-dense store


def pallas_mha(q, k, v, kpm, rel_bias, scale, num_heads, causal):
    # q/k/v: (B,T,D) batch-first (no HBM transposes around attention); kpm: (B,1,Tk) f32;
    # rel_bias: (B,H,Tq,Tk) | None.  Grid over batch only.
    # TODO(synk): for long sequences, grid over (B,H) plus a KV-tile axis with an
    # online-softmax accumulator (flash pattern) to bound the score block on 64-MiB v7x.
    B, Tq, D = q.shape
    Tk = k.shape[1]
    has_rel = rel_bias is not None
    args = [q, k, v, kpm] + ([rel_bias] if has_rel else [])
    in_specs = [pl.BlockSpec((1, Tq, D), lambda b: (b, 0, 0)),
                pl.BlockSpec((1, Tk, D), lambda b: (b, 0, 0)),
                pl.BlockSpec((1, Tk, D), lambda b: (b, 0, 0)),
                pl.BlockSpec((1, 1, Tk), lambda b: (b, 0, 0))]
    if has_rel:
        in_specs.append(pl.BlockSpec((1, num_heads, Tq, Tk), lambda b: (b, 0, 0, 0)))
    return pl.pallas_call(
        functools.partial(_mha_kernel, H=num_heads, dh=D // num_heads, scale=scale,
                          causal=causal, has_rel=has_rel),
        out_shape=jax.ShapeDtypeStruct((B, Tq, D), jnp.float32),
        grid=(B,),
        in_specs=in_specs,
        out_specs=pl.BlockSpec((1, Tq, D), lambda b: (b, 0, 0)),
        compiler_params=_compiler_params(),
    )(*args)


def _copy_attn_kernel(q_ref, kg_ref, m_ref, o_ref, *, scale):
    q = (q_ref[0].astype(jnp.float32) * scale).astype(_DOT_DTYPE)   # (T, D)
    kg = kg_ref[0].astype(_DOT_DTYPE)                               # (S, D)
    s = jax.lax.dot_general(q, kg, (((1,), (1,)), ((), ())),
                            preferred_element_type=jnp.float32)     # (T, S)
    s = jnp.where(m_ref[0] > 0.5, _NEG_INF, s)
    mx = jnp.max(s, axis=-1, keepdims=True)
    e = jnp.exp(s - mx)
    o_ref[0] = (e * pl.reciprocal(jnp.sum(e, axis=-1, keepdims=True),
                                  approx=True)).astype(o_ref.dtype)


def pallas_copy_attn(q, kg, padding_mask, scale):
    # q: (B,T,D); kg: (B,S,D); padding_mask: (B,S) bool -> copy softmax (B,T,S)
    B, T, D = q.shape
    S = kg.shape[1]
    m = padding_mask.astype(jnp.float32).reshape(B, 1, S)
    return pl.pallas_call(
        functools.partial(_copy_attn_kernel, scale=scale),
        out_shape=jax.ShapeDtypeStruct((B, T, S), jnp.float32),
        grid=(B,),
        in_specs=[pl.BlockSpec((1, T, D), lambda b: (b, 0, 0)),
                  pl.BlockSpec((1, S, D), lambda b: (b, 0, 0)),
                  pl.BlockSpec((1, 1, S), lambda b: (b, 0, 0))],
        out_specs=pl.BlockSpec((1, T, S), lambda b: (b, 0, 0)),
        compiler_params=_compiler_params(),
    )(q, kg, m)


# ----------------------------- model components ----------------------------

def multihead_attention_core(p, query, key_value, key_padding_mask=None,
                             causal=False, rel_bias=None):
    # query: (B,Tq,D); key_value: (B,Tk,D); returns pre-output-projection (B,Tq,D)
    B, _, D = query.shape
    Tk = key_value.shape[1]
    H = p["num_heads"]
    if query is key_value:                                   # fused QKV (one matmul)
        qkv = pallas_linear(query, p["w_qkv"], p["b_qkv"])
        q, k, v = jnp.split(qkv, 3, axis=-1)
    else:                                                    # Q + fused KV
        q = pallas_linear(query, p["w_qkv"][:, :D], p["b_qkv"][:, :D])
        kv = pallas_linear(key_value, p["w_qkv"][:, D:], p["b_qkv"][:, D:])
        k, v = jnp.split(kv, 2, axis=-1)
    if key_padding_mask is None:
        kpm = jnp.zeros((B, 1, Tk), jnp.float32)
    else:
        kpm = key_padding_mask.astype(jnp.float32).reshape(B, 1, Tk)
    return pallas_mha(q, k, v, kpm, rel_bias, 1.0 / math.sqrt(D // H), H, causal)


def transformer_layer(p, x, kv=None, self_padding_mask=None, causal=False,
                      external_memories=None, external_padding_mask=None, rel_bias=None):
    residual = x
    kv_in = x if kv is None else kv
    attn = multihead_attention_core(p["self_attn"], x, kv_in,
                                    key_padding_mask=self_padding_mask,
                                    causal=causal, rel_bias=rel_bias)
    x = pallas_linear_add_ln(attn, residual, p["self_attn"]["wo"], p["self_attn"]["bo"],
                             p["ln1_g"], p["ln1_b"])
    if external_memories is not None:
        residual = x
        attn = multihead_attention_core(p["ext_attn"], x, external_memories,
                                        key_padding_mask=external_padding_mask)
        x = pallas_linear_add_ln(attn, residual, p["ext_attn"]["wo"], p["ext_attn"]["bo"],
                                 p["ln2_g"], p["ln2_b"])
    x = pallas_ffn_ln(x, p["ffn"], p["ln3_g"], p["ln3_b"])
    return x


def token_encoder_forward(p, tok, chars):
    # tok: (B,S) int; chars: (B,S,Lc) int  -> (B,S,embed_dim)
    B, S, Lc = chars.shape
    cd = p["char_embed"].shape[1]
    char_emb = jnp.take(p["char_embed"], chars, axis=0).reshape(B * S, Lc, cd)
    convs = []
    for (w, oc), (Wc, bc) in zip(p["filters"], p["conv_params"]):
        npos = Lc - w + 1
        idx = jnp.arange(npos)[:, None] + jnp.arange(w)[None, :]
        windows = char_emb[:, idx, :].reshape(B * S * npos, w * cd)   # im2col (Conv1d NCW)
        y = pallas_linear(windows, Wc, bc).reshape(B * S, npos, oc)
        y = jnp.maximum(jnp.max(y, axis=1), 0.0)                      # max-pool over time + relu
        convs.append(y)
    conv = jnp.concatenate(convs, axis=-1)
    # TODO(synk): reference CNNEncoder applies a Highway block here; its source is not provided.
    char_repr = pallas_linear(conv, p["char_out_w"], p["char_out_b"]).reshape(B, S, -1)
    tok_repr = jnp.take(p["token_embed"], tok, axis=0)
    cat = jnp.concatenate([char_repr, tok_repr], axis=-1)
    return pallas_linear(cat, p["out_w"], p["out_b"])


def relation_encoder_forward(p, bank, lengths):
    # bank: (R,L) relation-token ids; lengths: (R,)
    R, L = bank.shape
    x = jnp.take(p["rel_embed"], bank, axis=0)                        # (R,L,rel_dim)
    Hd = p["w_hh"].shape[0]
    # Input-to-hidden projection hoisted out of the recurrence: one batched Pallas matmul.
    gx_all = pallas_linear(x.reshape(R * L, -1), p["w_ih"], p["b_ih"]).reshape(R, L, 3 * Hd)
    h0 = jnp.zeros((R, Hd), jnp.float32)

    # TODO(synk): reference RelationEncoder is a (bi)directional multi-layer GRU over packed
    # sequences; only the h @ w_hh recurrence stays in lax.scan.
    def step(h, t):
        gx = jax.lax.dynamic_index_in_dim(gx_all, t, axis=1, keepdims=False)
        gh = h @ p["w_hh"] + p["b_hh"]
        xr, xz, xn = jnp.split(gx, 3, axis=-1)
        hr, hz, hn = jnp.split(gh, 3, axis=-1)
        r = jax.nn.sigmoid(xr + hr)
        z = jax.nn.sigmoid(xz + hz)
        n = jnp.tanh(xn + r * hn)
        h_new = (1.0 - z) * n + z * h
        valid = (t < lengths)[:, None]
        return jnp.where(valid, h_new, h), None

    h, _ = jax.lax.scan(step, h0, jnp.arange(L))
    return pallas_linear(h, p["out_w"], p["out_b"])                   # (R, embed_dim)


def sinusoidal_positions(S, B, D, offset=0):
    half = D // 2
    freq = jnp.exp(jnp.arange(half, dtype=jnp.float32) * (-math.log(10000.0) / (half - 1)))
    pos = (offset + jnp.arange(S, dtype=jnp.float32))[:, None] * freq[None, :]
    emb = jnp.concatenate([jnp.sin(pos), jnp.cos(pos)], axis=-1)      # (S, D)
    return jnp.broadcast_to(emb[None, :, :], (B, S, D))


def decode_layer_forward(p, probe, graph_state, snt_state, graph_padding_mask,
                         snt_padding_mask, copy_seq, target):
    # all batch-first: probe/snt_state (B,T,D), graph_state (B,Sg,D),
    # masks (B,*) bool, copy_seq (B,Sg) int, target (B,T) int
    x = probe
    for lp in p["layers"]:
        x = transformer_layer(lp, x, kv=snt_state,
                              self_padding_mask=snt_padding_mask, causal=True,
                              external_memories=graph_state,
                              external_padding_mask=graph_padding_mask)
    B, T, D = x.shape
    gen_probs, q, gate = pallas_decoder_head(x, p)         # (B,T,Vp), (B,T,D), (B,T,1)
    Vp = gen_probs.shape[-1]

    kg = pallas_linear(graph_state, p["copy_k_w"], p["copy_k_b"])          # (B,Sg,D)
    copy_probs = pallas_copy_attn(q, kg, graph_padding_mask, 1.0 / math.sqrt(D))  # (B,T,Sg)

    # TODO(synk): reference TokenGenerator builds an extended local copy vocabulary;
    # approximated by a scatter-add of copy attention onto the predictable vocab via cp_seq.
    def _scatter_one(probs_ts, seq_s):                                 # (T,Sg),(Sg,)
        return jnp.zeros((T, Vp), jnp.float32).at[:, seq_s].add(probs_ts)
    copy_vocab = jax.vmap(_scatter_one)(copy_probs, copy_seq)          # (B,T,Vp)

    probs = gate * gen_probs + (1.0 - gate) * copy_vocab
    ll = jnp.log(probs + 1e-12)
    tgt_ll = jnp.take_along_axis(ll, target[:, :, None], axis=-1)[..., 0]
    mask = (target != PAD).astype(jnp.float32)
    return -(tgt_ll * mask).sum() / jnp.maximum(mask.sum(), 1.0)


def generator_forward(params, data):
    D = params["embed_dim"]
    scale = math.sqrt(D)

    # batch-first views of the (seq-first) integer inputs: tiny int transposes only
    concept_bt = data["concept"].T                       # (B, Sc)
    concept_char_bt = data["concept_char"].transpose(1, 0, 2)
    concept_depth_bt = data["concept_depth"].T
    token_in_bt = data["token_in"].T                     # (B, St)
    token_char_bt = data["token_char_in"].transpose(1, 0, 2)
    token_out_bt = data["token_out"].T
    cp_seq_bt = data["cp_seq"].T                         # (B, Sc-1)

    # ---- encode_step (train=True) ----
    concept_enc = scale * token_encoder_forward(params["concept_encoder"],
                                                concept_bt, concept_char_bt)   # (B,Sc,D)
    depth_emb = jnp.take(params["concept_depth"], concept_depth_bt, axis=0)
    concept_repr = pallas_add_layer_norm(concept_enc, depth_emb,
                                         params["concept_ln_g"], params["concept_ln_b"])
    concept_mask = concept_bt == PAD                     # (B, Sc)

    relation = relation_encoder_forward(params["relation_encoder"],
                                        data["relation_bank"], data["relation_length"])  # (R,D)
    # TODO(synk): exact RelationMultiheadAttention (relation-augmented keys/values) source not
    # provided; relation enters graph attention as a per-head additive score bias instead.
    # Project (R,D)->(R,H) first, then gather: avoids the dense (Sc,Sc,B,D) tensor + matmul.
    rel_head = pallas_linear(relation, params["rel_bias_w"], params["rel_bias_b"])  # (R,H)
    rel_idx_bt = data["relation"].transpose(2, 0, 1)                                # (B,Sc,Sc)
    rel_bias = jnp.moveaxis(jnp.take(rel_head, rel_idx_bt, axis=0), -1, 1)          # (B,H,Sc,Sc)

    x = concept_repr
    for lp in params["graph_layers"]:
        x = transformer_layer(lp, x, self_padding_mask=concept_mask, rel_bias=rel_bias)
    concept_repr = x

    probe = pallas_linear(concept_repr[:, :1], params["probe_w"], params["probe_b"],
                          act="tanh")                                  # (B,1,D)
    concept_repr = concept_repr[:, 1:]
    concept_mask = concept_mask[:, 1:]

    # ---- token side ----
    B, St = token_in_bt.shape
    token_enc = scale * token_encoder_forward(params["token_encoder"],
                                              token_in_bt, token_char_bt)
    token_repr = pallas_add_layer_norm(token_enc, sinusoidal_positions(St, B, D),
                                       params["token_ln_g"], params["token_ln_b"])
    # dropout p=0.0 -> identity
    token_mask = token_in_bt == PAD

    x = token_repr
    for lp in params["snt_layers"]:
        x = transformer_layer(lp, x, self_padding_mask=token_mask, causal=True,
                              external_memories=concept_repr,
                              external_padding_mask=concept_mask)
    token_repr = x

    probe = jnp.broadcast_to(probe, token_repr.shape)                  # probe.expand_as(...)
    return decode_layer_forward(params["decoder"], probe, concept_repr, token_repr,
                                concept_mask, token_mask, cp_seq_bt, token_out_bt)


# ----------------------------- parameter init ------------------------------

def _normal(key, shape, std=0.02):
    return std * jax.random.normal(key, shape, dtype=jnp.float32)


def _embedding(key, n, d, std=0.02, zero=False):
    w = jnp.zeros((n, d), jnp.float32) if zero else _normal(key, (n, d), std)
    return w.at[PAD].set(0.0)


def init_mha_params(key, D, H):
    ks = jax.random.split(key, 2)
    return dict(num_heads=H,
                w_qkv=_normal(ks[0], (D, 3 * D)), b_qkv=jnp.zeros((1, 3 * D), jnp.float32),
                wo=_normal(ks[1], (D, D)), bo=jnp.zeros((1, D), jnp.float32))


def init_layer_params(key, D, F, H, with_external):
    ks = jax.random.split(key, 4)
    p = dict(self_attn=init_mha_params(ks[0], D, H),
             ln1_g=jnp.ones((1, D), jnp.float32), ln1_b=jnp.zeros((1, D), jnp.float32),
             ffn=dict(w1=_normal(ks[1], (D, F)), b1=jnp.zeros((1, F), jnp.float32),
                      w2=_normal(ks[2], (F, D)), b2=jnp.zeros((1, D), jnp.float32)),
             ln3_g=jnp.ones((1, D), jnp.float32), ln3_b=jnp.zeros((1, D), jnp.float32))
    if with_external:
        p["ext_attn"] = init_mha_params(ks[3], D, H)
        p["ln2_g"] = jnp.ones((1, D), jnp.float32)
        p["ln2_b"] = jnp.zeros((1, D), jnp.float32)
    return p


def init_token_encoder_params(key, vocab, char_vocab, char_dim, tok_dim, embed_dim,
                              filters, char2tok_dim):
    ks = jax.random.split(key, 4 + len(filters))
    conv_params, total = [], 0
    for i, (w, oc) in enumerate(filters):
        conv_params.append((_normal(ks[4 + i], (w * char_dim, oc)),
                            jnp.zeros((1, oc), jnp.float32)))
        total += oc
    return dict(char_embed=_embedding(ks[0], char_vocab, char_dim),
                token_embed=_embedding(ks[1], vocab, tok_dim),
                filters=tuple(filters),
                conv_params=conv_params,
                char_out_w=_normal(ks[2], (total, char2tok_dim)),
                char_out_b=jnp.zeros((1, char2tok_dim), jnp.float32),
                out_w=_normal(ks[3], (char2tok_dim + tok_dim, embed_dim)),
                out_b=jnp.zeros((1, embed_dim), jnp.float32))


def init_relation_encoder_params(key, rel_vocab, rel_dim, hidden, embed_dim):
    ks = jax.random.split(key, 4)
    return dict(rel_embed=_embedding(ks[0], rel_vocab, rel_dim),
                w_ih=_normal(ks[1], (rel_dim, 3 * hidden)),
                w_hh=_normal(ks[2], (hidden, 3 * hidden)),
                b_ih=jnp.zeros((1, 3 * hidden), jnp.float32),
                b_hh=jnp.zeros((1, 3 * hidden), jnp.float32),
                out_w=_normal(ks[3], (hidden, embed_dim)),
                out_b=jnp.zeros((1, embed_dim), jnp.float32))


def init_generator_params(key, cfg):
    D, F, H = cfg["embed_dim"], cfg["ff_embed_dim"], cfg["num_heads"]
    ks = jax.random.split(key, 10)
    dks = jax.random.split(ks[7], 4)
    return dict(
        embed_dim=D, num_heads=H,
        concept_encoder=init_token_encoder_params(
            ks[0], cfg["concept_vocab"], cfg["concept_char_vocab"],
            cfg["concept_char_dim"], cfg["concept_dim"], D,
            cfg["cnn_filters"], cfg["char2concept_dim"]),
        token_encoder=init_token_encoder_params(
            ks[1], cfg["token_vocab"], cfg["token_char_vocab"],
            cfg["word_char_dim"], cfg["word_dim"], D,
            cfg["cnn_filters"], cfg["char2word_dim"]),
        relation_encoder=init_relation_encoder_params(
            ks[2], cfg["relation_vocab"], cfg["rel_dim"], cfg["rnn_hidden_size"], D),
        graph_layers=[init_layer_params(k, D, F, H, False)
                      for k in jax.random.split(ks[3], cfg["graph_layers"])],
        snt_layers=[init_layer_params(k, D, F, H, True)
                    for k in jax.random.split(ks[4], cfg["snt_layers"])],
        rel_bias_w=_normal(ks[5], (D, H)),
        rel_bias_b=jnp.zeros((1, H), jnp.float32),
        concept_depth=jnp.zeros((32, D), jnp.float32),            # reset_parameters: constant 0
        concept_ln_g=jnp.ones((1, D), jnp.float32), concept_ln_b=jnp.zeros((1, D), jnp.float32),
        token_ln_g=jnp.ones((1, D), jnp.float32), token_ln_b=jnp.zeros((1, D), jnp.float32),
        probe_w=_normal(ks[8], (D, D)),                           # reset_parameters: N(0, 0.02)
        probe_b=jnp.zeros((1, D), jnp.float32),
        decoder=dict(
            layers=[init_layer_params(k, D, F, H, True)
                    for k in jax.random.split(ks[6], cfg["inference_layers"])],
            gen_w=_normal(dks[0], (D, cfg["predictable_vocab"])),
            gen_b=jnp.zeros((1, cfg["predictable_vocab"]), jnp.float32),
            copy_q_w=_normal(dks[1], (D, D)), copy_q_b=jnp.zeros((1, D), jnp.float32),
            copy_k_w=_normal(dks[2], (D, D)), copy_k_b=jnp.zeros((1, D), jnp.float32),
            gate_w=_normal(dks[3], (D, 1)), gate_b=jnp.zeros((1, 1), jnp.float32)),
    )


# ----------------------------------- main -----------------------------------

if __name__ == "__main__":
    cfg = dict(embed_dim=32, ff_embed_dim=64, num_heads=4, dropout=0.0,
               snt_layers=1, graph_layers=1, inference_layers=1,
               concept_vocab=50, concept_char_vocab=30,
               token_vocab=60, token_char_vocab=30,
               relation_vocab=20, predictable_vocab=60,
               concept_char_dim=8, concept_dim=16, word_char_dim=8, word_dim=16,
               cnn_filters=[(3, 16)], char2concept_dim=16, char2word_dim=16,
               rel_dim=16, rnn_hidden_size=16, rnn_num_layers=1)

    root = jax.random.PRNGKey(0)
    pkey, dkey = jax.random.split(root)
    params = init_generator_params(pkey, cfg)

    Sc, St, B, Lc, R, Lr = 5, 6, 2, 7, 10, 4
    ks = jax.random.split(dkey, 10)
    concept = jax.random.randint(ks[0], (Sc, B), 1, cfg["concept_vocab"]).at[-1, 1].set(PAD)
    data = dict(
        concept=concept,
        concept_char=jax.random.randint(ks[1], (Sc, B, Lc), 1, cfg["concept_char_vocab"]),
        concept_depth=jax.random.randint(ks[2], (Sc, B), 0, 8),
        relation_bank=jax.random.randint(ks[3], (R, Lr), 1, cfg["relation_vocab"]).at[0].set(PAD),
        relation_length=jax.random.randint(ks[4], (R,), 1, Lr + 1),
        relation=jax.random.randint(ks[5], (Sc, Sc, B), 0, R),
        token_in=jax.random.randint(ks[6], (St, B), 1, cfg["token_vocab"]).at[-1, 0].set(PAD),
        token_char_in=jax.random.randint(ks[7], (St, B, Lc), 1, cfg["token_char_vocab"]),
        token_out=jax.random.randint(ks[8], (St, B), 1, cfg["predictable_vocab"]).at[-1, 0].set(PAD),
        cp_seq=jax.random.randint(ks[9], (Sc - 1, B), 1, cfg["predictable_vocab"]),
    )

    loss = generator_forward(params, data)
    jax.block_until_ready(loss)
    assert bool(jnp.isfinite(loss)), loss
    print("KERNEL_OK")
</pallas_src>

<mosaic_0001>
module attributes {stable_mosaic.version = 11 : i64} {
  func.func @_probe(%arg0: i32, %arg1: memref<8x128xf32, #tpu.memory_space<vmem>>, %arg2: memref<8x128xf32, #tpu.memory_space<vmem>>) attributes {dimension_semantics = [#tpu.dimension_semantics<arbitrary>], iteration_bounds = array<i64: 2>, scalar_prefetch = 0 : i64, scratch_operands = 0 : i64, tpu.core_type = #tpu.core_type<tc>, window_params = [{pipeline_mode = #tpu.pipeline_mode<synchronous>, transform_indices = @transform_0, window_bounds = array<i64: 8, 128>}, {pipeline_mode = #tpu.pipeline_mode<synchronous>, transform_indices = @transform_1, window_bounds = array<i64: 8, 128>}]} {
    %c0 = arith.constant 0 : index
    %c0_0 = arith.constant 0 : index
    %0 = vector.load %arg1[%c0, %c0_0] : memref<8x128xf32, #tpu.memory_space<vmem>>, vector<8x128xf32>
    %cst = arith.constant 1.000000e+00 : f32
    %1 = vector.broadcast %cst : f32 to vector<8x128xf32>
    %2 = arith.addf %0, %1 : vector<8x128xf32>
    %c0_1 = arith.constant 0 : index
    %c0_2 = arith.constant 0 : index
    %3 = vector.load %arg2[%c0_1, %c0_2] : memref<8x128xf32, #tpu.memory_space<vmem>>, vector<8x128xf32>
    tpu.vector_store %arg2[%c0_1, %c0_2], %2 {strides = array<i32>} : memref<8x128xf32, #tpu.memory_space<vmem>>, vector<8x128xf32>,
    return
  }
  func.func @transform_0(%arg0: i32) -> (i32, i32) {
    %c0_i32 = arith.constant 0 : i32
    %c0_i32_0 = arith.constant 0 : i32
    %c0_i32_1 = arith.constant 0 : i32
    return %c0_i32, %c0_i32_0 : i32, i32
  }
  func.func @transform_1(%arg0: i32) -> (i32, i32) {
    %c0_i32 = arith.constant 0 : i32
    %c0_i32_0 = arith.constant 0 : i32
    %c0_i32_1 = arith.constant 0 : i32
    return %c0_i32, %c0_i32_0 : i32, i32
  }
}

module attributes {stable_mosaic.version = 11 : i64} {
  func.func @_linear_kernel(%arg0: i32, %arg1: memref<32x24xf32, #tpu.memory_space<vmem>>, %arg2: memref<24x16xbf16, #tpu.memory_space<vmem>>, %arg3: memref<1x16xf32, #tpu.memory_space<vmem>>, %arg4: memref<32x16xf32, #tpu.memory_space<vmem>>) attributes {dimension_semantics = [#tpu.dimension_semantics<parallel>], iteration_bounds = array<i64: 2>, scalar_prefetch = 0 : i64, scratch_operands = 0 : i64, tpu.core_type = #tpu.core_type<tc>, window_params = [{transform_indices = @transform_0, window_bounds = array<i64: 32, 24>}, {pipeline_mode = #tpu.pipeline_mode<synchronous>, transform_indices = @transform_1, window_bounds = array<i64: 24, 16>}, {pipeline_mode = #tpu.pipeline_mode<synchronous>, transform_indices = @transform_2, window_bounds = array<i64: 1, 16>}, {transform_indices = @transform_3, window_bounds = array<i64: 32, 16>}]} {
    %c0 = arith.constant 0 : index
    %c0_0 = arith.constant 0 : index
    %0 = vector.load %arg1[%c0, %c0_0] : memref<32x24xf32, #tpu.memory_space<vmem>>, vector<32x24xf32>
    %1 = arith.truncf %0 : vector<32x24xf32> to vector<32x24xbf16>
    %c0_1 = arith.constant 0 : index
    %c0_2 = arith.constant 0 : index
    %2 = vector.load %arg2[%c0_1, %c0_2] : memref<24x16xbf16, #tpu.memory_space<vmem>>, vector<24x16xbf16>
    %cst = arith.constant dense<0.000000e+00> : vector<32x16xf32>
    %3 = tpu.matmul %1, %2, %cst {dimension_numbers = #tpu.dot_dimension_numbers<[1], [0], [0], [1], [0, 0, 1, 1], [], []>} : vector<32x24xbf16>, vector<24x16xbf16>, vector<32x16xf32> -> vector<32x16xf32>
    %c0_3 = arith.constant 0 : index
    %c0_4 = arith.constant 0 : index
    %4 = vector.load %arg3[%c0_3, %c0_4] : memref<1x16xf32, #tpu.memory_space<vmem>>, vector<1x16xf32>
    %5 = vector.broadcast %4 : vector<1x16xf32> to vector<32x16xf32>
    %6 = arith.addf %3, %5 : vector<32x16xf32>
    %c0_5 = arith.constant 0 : index
    %c0_6 = arith.constant 0 : index
    %7 = vector.load %arg4[%c0_5, %c0_6] : memref<32x16xf32, #tpu.memory_space<vmem>>, vector<32x16xf32>
    tpu.vector_store %arg4[%c0_5, %c0_6], %6 {strides = array<i32>} : memref<32x16xf32, #tpu.memory_space<vmem>>, vector<32x16xf32>,
    return
  }
  func.func @transform_0(%arg0: i32) -> (i32, i32) {
    %c0_i32 = arith.constant 0 : i32
    %c0_i32_0 = arith.constant 0 : i32
    return %arg0, %c0_i32 : i32, i32
  }
  func.func @transform_1(%arg0: i32) -> (i32, i32) {
    %c0_i32 = arith.constant 0 : i32
    %c0_i32_0 = arith.constant 0 : i32
    %c0_i32_1 = arith.constant 0 : i32
    return %c0_i32, %c0_i32_0 : i32, i32
  }
  func.func @transform_2(%arg0: i32) -> (i32, i32) {
    %c0_i32 = arith.constant 0 : i32
    %c0_i32_0 = arith.constant 0 : i32
    %c0_i32_1 = arith.constant 0 : i32
    return %c0_i32, %c0_i32_0 : i32, i32
  }
  func.func @transform_3(%arg0: i32) -> (i32, i32) {
    %c0_i32 = arith.constant 0 : i32
    %c0_i32_0 = arith.constant 0 : i32
    return %arg0, %c0_i32 : i32, i32
  }
}

</mosaic_0001>

<bundles_post_ra>
// kernel: tpu_custom_call.1
= control target key start
LH: loop header
LB: loop body
LE: loop exit
PB: predicated region body
PF: predicated region fallthrough
CT: control target
= control target key end

     0   :  { %6 = vsyncpa [#allocation3], 0  ;;  %s305_s0 = inlined_call_operand.hbm [shape: f32[8,128], index: 0, kind: input, shape index: {}]   ;;  %s306_s1 = inlined_call_operand.hbm [shape: f32[8,128], index: 1, kind: output, shape index: {}]  }
   0x1   :  { %7 = vsyncpa [#allocation4], 0  ;;  %s258_s6 = smov 0  }
   0x2 LB: > { %s145_s7 = sadd.s32 4294967295, %s244_s6   ;;  %p146_p0 = scmp.ge.s32.totalorder %s244_s6, 1  ;;  %s244_s6 = sphi %s258_s6, %s13_s6  }
   0x3   : > { %p60_p1 = scmp.lt.s32.totalorder %s244_s6, 3  ;;  %p270_p3 = scmp.eq.s32.totalorder %s145_s7, 0 }
   0x4   : > { %s246_s10 = smov [#allocation2]  }
   0x5   : > { %p266_p2 = pnand %p146_p0, %p60_p1  ;;  %s73_s11 = sshll.u32 %s246_s10, 4  ;;  %s74_s11 = int_to_ptr.vmem [resolvable:$true] %s73_s11 }
   0x6   : > { %s191_s12 = scalar_lea.vmem %s74_s11, 128  ;;  %p199_p10 = scmp.lt.s32.totalorder %s74_s11, %s74_s11 }
   0x7   : > { %p162_p4 = pneg %p266_p2  ;;  %p192_p7 = scmp.ne.s32.totalorder %s74_s11, %s191_s12 }
   0x8   : > { %p200_p11 = scmp.lt.s32.totalorder %s191_s12, %s191_s12 }
   0x9   : > { %p163_p5 = pnand %p270_p3, %p162_p4 }
   0xa   : > { %p201_p12 = por %p200_p11, %p199_p10 }
   0xb   : > { %p182_p6 = pneg %p163_p5 }
   0xd   : > { %p194_p8 = pnand %p192_p7, %p182_p6 }
   0xf   : > { %p195_p9 = pneg %p194_p8 }
  0x11   : > { %p202_p13 = pnand %p201_p12, %p195_p9 }
  0x13   : > { %205 = shalt.err (!%p202_p13)
}
  0x14   : > { %165 = dma.hbm_to_vmem [thread:$0]  (!%p163_p5), %s305_s0, 128, %s74_s11, [#allocation3]  }
  0x15   : > { %86 = sbr.rel (%p266_p2) target bundleno = 42 (0x2a), region = 24 }
  0x1a   : > { %235 = dma.done.wait (%p270_p3), [#allocation3], 128  }
  0x1b   : > { %237 = vsyncadd (%p270_p3), [#allocation3], 4294967168  ;;  %s247_s15 = smov [#allocation5]   ;;  %v96_v0 = vld [vmem:[#allocation2] sm:$0xff]  ;;  %p287_p0 = scmp.eq.s32.totalorder %s145_s7, 1 }
  0x1c   : > { %s106_s16 = sshll.u32 %s247_s15, 4  ;;  %v97_v1 = vadd.f32 1.0, %v96_v0  ;;  %s107_s16 = int_to_ptr.vmem [resolvable:$true] %s106_s16 }
  0x1d   : > { %s206_s18 = scalar_lea.vmem %s107_s16, 128  ;;  %p213_p5 = scmp.lt.s32.totalorder %s107_s16, %s107_s16 }
  0x1e   : > { %98 = vst [vmem:[#allocation5] sm:$0xff] %v97_v1  ;;  %p207_p1 = scmp.ne.s32.totalorder %s107_s16, %s206_s18  ;;  %p214_p6 = scmp.lt.s32.totalorder %s206_s18, %s206_s18 }
  0x20   : > { %p208_p2 = pnand %p207_p1, %p287_p0  ;;  %p215_p7 = por %p214_p6, %p213_p5 }
  0x22   : > { %p209_p4 = pneg %p208_p2 }
  0x24   : > { %p216_p3 = pnand %p215_p7, %p209_p4 }
  0x26   : > { %219 = shalt.err (!%p216_p3)
}
  0x27   : > { %159 = dma.vmem_to_hbm [thread:$0]  (%p287_p0), %s107_s16, 128, %s306_s1, [#allocation4]  }
  0x28   : > { %239 = dma.done.wait (%p287_p0), [#allocation4], 128  }
  0x29   : > { %241 = vsyncadd (%p287_p0), [#allocation4], 4294967168 }
  0x2a PF: > { %s13_s6 = sadd.s32 1, %s244_s6  }
  0x2b   : > { %p10_p8 = scmp.ge.s32.totalorder %s13_s6, 4  }
  0x2d   :  { %12 = sbr.rel (!%p10_p8) target bundleno = 2 (0x2), region = 53 }
  0x32   :  { %119 = vsyncpa [#allocation3], 1 }
  0x33   :  { %121 = vsyncpa [#allocation3 + $0x1], 1 }
  0x34   :  { %122 = vsyncpa [#allocation4], 1 }
  0x35   :  { %124 = vsyncpa [#allocation4 + $0x1], 1 }

// kernel: tpu_custom_call.1
= control target key start
LH: loop header
LB: loop body
LE: loop exit
PB: predicated region body
PF: predicated region fallthrough
CT: control target
= control target key end

     0   :  { %s388_s12 = smov 0   ;;  %s414_s0 = inlined_call_operand.vmem [shape: f32[64,24], index: 0, kind: input, shape index: {}]   ;;  %s415_s1 = inlined_call_operand.vmem [shape: bf16[24,16], index: 1, kind: input, shape index: {}]   ;;  %s416_s2 = inlined_call_operand.vmem [shape: f32[1,16], index: 2, kind: input, shape index: {}]   ;;  %s417_s3 = inlined_call_operand.vmem [shape: f32[64,16], index: 3, kind: output, shape index: {}]  }
   0x1 LB: > { %s321_s13 = sadd.s32 4294967295, %s366_s12   ;;  %p325_p0 = scmp.ge.s32.totalorder %s366_s12, 1  ;;  %s366_s12 = sphi %s388_s12, %s13_s12  }
   0x2   : > { %p138_p1 = scmp.lt.s32.totalorder %s366_s12, 3 }
   0x4   : > { %p139_p2 = pnand %p325_p0, %p138_p1 }
   0x5   : > { %s326_s18 = sshll.u32 (!%p139_p2), %s321_s13, 2 }
   0x6   : > { %142 = sbr.rel (%p139_p2) target bundleno = 222 (0xde), region = 32  ;;  %p163_p3 = scmp.lt.s32.totalorder (!%p139_p2), %s326_s18, 7 }
   0xb   : > { %v358_v0 = vld [vmem:[%s415_s1 + $0x8] ss:$0 sps:$4 sm:$0xff]   ;;  %vm207_vm0 = vcmask 1043456   ;;  %v359_v1 = vld [vmem:[%s415_s1] sm:$0xff]   ;;  %s419_s18 = smov (!%p163_p3, %s326_s18), 7  ;;  %vm200_vm1 = vcmask 195584  }
   0xc   : > { %349 = vmatprep.subr.msk.bf16.mxu0 %vm207_vm0, %v358_v0  ;;  %v209_v2 = vsel %vm207_vm0, %v358_v0, 0  ;;  %s327_s19 = sshll.u32 %s419_s18, 3  ;;  %v330_v10 = vld [vmem:[%s416_s2] ss:$0 sm:$0xff]  ;;  %vm260_vm2 = vcmask 130048  }
   0xd   : > { %342 = vmatpush3.bf16.msra.mxu0 %v209_v2  ;;  %s166_s22 = scalar_lea.vmem %s414_s0, %s327_s19  ;;  %s172_s25 = scalar_lea.vmem %s417_s3, %s327_s19 }
   0xe   : > { %343 = vmatprep.subr.bf16.mxu0 %v359_v1  ;;  %v175_v3 = vld [vmem:[%s166_s22] sm:$0xff]  ;;  %v176_v4 = vld [vmem:[%s166_s22 + $0x8] sm:$0xff]  ;;  %v177_v5 = vld [vmem:[%s166_s22 + $0x10] sm:$0xff] }
   0xf   : > { %v179_v6 = vpack.c.bf16 %v176_v4, %v175_v3  ;;  %v178_v7 = vld [vmem:[%s166_s22 + $0x18] sm:$0xff] }
  0x10   : > { %v180_v8 = vpack.c.bf16 %v178_v7, %v177_v5 }
  0x11   : > { %344 = vmatpush3.bf16.msra.mxu0 %v359_v1  ;;  %345 = vmatprep.mubr.msk.bf16.mxu0 %vm200_vm1, %v179_v6 }
  0x14   : > { %346 = vmatmul.mubr.msk.bf16.vlgmr.msra.gmra.mxu0 %vm200_vm1, %v180_v8 }
  0xd4   : > { %v347_v9 = vpop.f32.mrf.mxu0 }
  0xd5   : > { %v254_v16 = vadd.f32 %v347_v9, %v330_v10 }
  0xd6   : > { %v245_v11 = vpop.f32.mrf.mxu0 }
  0xd7   : > { %v246_v12 = vadd.f32 %v330_v10, %v245_v11  ;;  %263 = vst.msk [vmem:[%s172_s25 + $0x10] sm:$0xff] %vm260_vm2, %v254_v16 }
  0xd8   : > { %v348_v13 = vpop.f32.mrf.mxu0 }
  0xd9   : > { %261 = vst.msk [vmem:[%s172_s25] sm:$0xff] %vm260_vm2, %v246_v12  ;;  %v257_v17 = vadd.f32 %v348_v13, %v330_v10 }
  0xda   : > { %v248_v14 = vpop.f32.mrf.mxu0 }
  0xdb   : > { %v249_v15 = vadd.f32 %v330_v10, %v248_v14  ;;  %264 = vst.msk [vmem:[%s172_s25 + $0x18] sm:$0xff] %vm260_vm2, %v257_v17 }
  0xdd   : > { %262 = vst.msk [vmem:[%s172_s25 + $0x8] sm:$0xff] %vm260_vm2, %v249_v15 }
  0xde PF: > { %s13_s12 = sadd.s32 1, %s366_s12  }
  0xdf   : > { %p10_p4 = scmp.ge.s32.totalorder %s13_s12, 4  }
  0xe1   :  { %12 = sbr.rel (!%p10_p4) target bundleno = 1 (0x1), region = 62 }

</bundles_post_ra>
